<compile_context>
chip_gen: v7x
topology: tpu7x:2x2x1
jax: 0.10.0
libtpu: 0.0.40
codegen_flags: <defaults>
</compile_context>

<pallas_src>
import functools

import jax
import jax.numpy as jnp
from jax import lax
from jax.experimental import pallas as pl
from jax.experimental.pallas import tpu as pltpu

BN_EPS = 1e-5
LANE = 128
GROUP_ALIGN = 16            # sublane alignment that also covers bf16 packing
VMEM_LIMIT_BYTES = 32 * 1024 * 1024


def _round_up(x, m):
    return ((x + m - 1) // m) * m


def _cdiv(a, b):
    return -(-a // b)


def _pad_last(x, target):
    pad = target - x.shape[-1]
    if pad == 0:
        return x
    cfg = [(0, 0)] * (x.ndim - 1) + [(0, pad)]
    return jnp.pad(x, cfg)


def _pick_group_tile(num_groups, K, c_max, *, target_rows=2048, min_steps=8,
                     vmem_row_budget_bytes=12 * 1024 * 1024):
    """Pick G (groups per tile, multiple of 16) and the padded group count.

    Rows per tile (K*G) stay in the ~512-2048 sweet spot, capped by a
    conservative per-tile VMEM budget (in + out, double buffered), and small
    enough that reasonably sized problems get >= min_steps grid steps
    (pipelining + v7x megacore sharding).  num_groups is zero-padded up to a
    multiple of G -- no whole-array fallback block.
    """
    bytes_per_row = max(c_max, LANE) * 16     # ~(in + out) * 2 buffers + slack
    rows_cap = max(GROUP_ALIGN * K, vmem_row_budget_bytes // bytes_per_row)
    rows = min(target_rows, rows_cap)
    g = max(GROUP_ALIGN, (rows // max(K, 1)) // GROUP_ALIGN * GROUP_ALIGN)
    g_steps = max(GROUP_ALIGN,
                  _round_up(_cdiv(num_groups, min_steps), GROUP_ALIGN))
    g = min(g, g_steps, _round_up(num_groups, GROUP_ALIGN))
    num_groups_pad = _round_up(num_groups, g)
    return g, num_groups_pad


# ----------------------------------------------------------------------------
# Pallas kernels
# ----------------------------------------------------------------------------
def _make_layer_kernel(K, G, num_groups, *, apply_bn_in, mask_tail, fuse_max):
    """One MLP layer.

    Inputs : x (K, G, cin), [scale, shift (1, cin)], W (cin, cout_p)
    Outputs: if fuse_max: stats (8, cout_p), hmax (G, cout_p), hmin (G, cout_p)
             else       : h (K, G, cout_p) bf16, stats (8, cout_p)
    stats rows: 0 = per-tile channel sums, 1 = per-tile channel sum-of-squares.
    """
    def kernel(*refs):
        if apply_bn_in:
            x_ref, scale_ref, shift_ref, w_ref = refs[:4]
            out_refs = refs[4:]
        else:
            x_ref, w_ref = refs[:2]
            out_refs = refs[2:]
        if fuse_max:
            stats_ref, hmax_ref, hmin_ref = out_refs
        else:
            h_ref, stats_ref = out_refs

        w = w_ref[...]
        cin = x_ref.shape[-1]
        cout = w.shape[-1]

        if apply_bn_in:
            # Hoisted once per tile (JAX does not CSE broadcast_in_dim).
            scale = jnp.broadcast_to(scale_ref[...], (G, cin))
            shift = jnp.broadcast_to(shift_ref[...], (G, cin))
        if mask_tail:
            gid = (pl.program_id(0) * G
                   + lax.broadcasted_iota(jnp.int32, (G, 1), 0))
            valid = (gid < num_groups).astype(jnp.float32)

        s1 = jnp.zeros((1, cout), jnp.float32)
        s2 = jnp.zeros((1, cout), jnp.float32)
        hmax = None
        hmin = None
        for k in range(K):                       # unrolled; K is small/static
            xk = x_ref[k]                        # (G, cin), contiguous tile
            if apply_bn_in:
                a = jnp.maximum(xk.astype(jnp.float32) * scale + shift, 0.0)
                if mask_tail:
                    a = a * valid                # keep padded groups at zero
                a = a.astype(w.dtype)
            else:
                a = xk.astype(w.dtype)           # first layer (padded x == 0)
            h = jnp.dot(a, w, preferred_element_type=jnp.float32)
            s1 = s1 + jnp.sum(h, axis=0, keepdims=True)
            s2 = s2 + jnp.sum(h * h, axis=0, keepdims=True)
            if fuse_max:
                hmax = h if hmax is None else jnp.maximum(hmax, h)
                hmin = h if hmin is None else jnp.minimum(hmin, h)
            else:
                h_ref[k] = h.astype(h_ref.dtype)     # bf16 intermediate
        stats_ref[0:1, :] = s1
        stats_ref[1:2, :] = s2
        if fuse_max:
            hmax_ref[...] = hmax
            hmin_ref[...] = hmin
    return kernel


def _make_avgpool_kernel(K, G):
    """BN + ReLU + mean over K (only used for pooling='avg')."""
    inv_k = 1.0 / K

    def kernel(h_ref, scale_ref, shift_ref, out_ref):
        c = h_ref.shape[-1]
        scale = jnp.broadcast_to(scale_ref[...], (G, c))
        shift = jnp.broadcast_to(shift_ref[...], (G, c))
        acc = None
        for k in range(K):                       # contiguous (G, C) slices
            a = jnp.maximum(h_ref[k].astype(jnp.float32) * scale + shift, 0.0)
            acc = a if acc is None else acc + a
        out_ref[...] = acc * inv_k
    return kernel


# ----------------------------------------------------------------------------
# Host-side BN fold (Chan combination of per-tile partials)
# ----------------------------------------------------------------------------
def _fold_bn(stats, num_tiles, G, K, num_groups, cout, cout_p, gamma, beta):
    stats = stats.reshape(num_tiles, 8, cout_p)
    s1 = stats[:, 0, :cout]                       # (T, cout)
    s2 = stats[:, 1, :cout]
    valid_g = jnp.clip(num_groups - jnp.arange(num_tiles) * G, 0, G)
    n_t = (valid_g.astype(jnp.float32) * K)[:, None]          # (T, 1)
    mean_t = s1 / n_t
    m2_t = s2 - s1 * mean_t
    n = float(num_groups * K)
    mean = jnp.sum(s1, axis=0) / n
    m2 = (jnp.sum(m2_t, axis=0)
          + jnp.sum(n_t * (mean_t - mean[None, :]) ** 2, axis=0))
    var = jnp.maximum(m2 / n, 0.0)                # biased var (BN training)
    scale = gamma.astype(jnp.float32) * lax.rsqrt(var + BN_EPS)
    shift = beta.astype(jnp.float32) - mean * scale
    return scale, shift


# ----------------------------------------------------------------------------
# Backbone (stacked 1x1 Conv -> BN(batch stats) -> ReLU) + pooling, tiled.
# ----------------------------------------------------------------------------
@functools.partial(jax.jit, static_argnames=("pooling",))
def backbone_and_pool(new_points, weights_p, gammas, betas, pooling="max"):
    """new_points: (B, M, K, Cin) -> (B, M, mlp[-1])"""
    B, M, K, C0 = new_points.shape
    num_groups = B * M

    cout_ps = [int(w.shape[1]) for w in weights_p]
    couts = [int(g.shape[0]) for g in gammas]
    c_max = max([C0] + cout_ps)

    G, num_groups_pad = _pick_group_tile(num_groups, K, c_max)
    num_tiles = num_groups_pad // G
    pad_groups = num_groups_pad - num_groups

    # k-major channels-last layout: (K, num_groups_pad, C0), f32, zero-padded.
    x = jnp.transpose(
        new_points.astype(jnp.float32).reshape(num_groups, K, C0), (1, 0, 2))
    if pad_groups:
        x = jnp.pad(x, ((0, 0), (0, pad_groups), (0, 0)))

    cp = pltpu.CompilerParams(dimension_semantics=("parallel",),
                              vmem_limit_bytes=VMEM_LIMIT_BYTES)

    n_layers = len(weights_p)
    h = x
    scale_p = shift_p = None
    scale_last = shift_last = None
    hmax = hmin = None

    for l in range(n_layers):
        w_p = weights_p[l]
        cin_p, cout_p = int(w_p.shape[0]), int(w_p.shape[1])
        cout = couts[l]
        apply_bn_in = l > 0
        is_last = l == n_layers - 1
        fuse_max = is_last and pooling != "avg"

        kernel = _make_layer_kernel(
            K, G, num_groups,
            apply_bn_in=apply_bn_in,
            mask_tail=(pad_groups > 0) and apply_bn_in,
            fuse_max=fuse_max)

        in_specs = [pl.BlockSpec((K, G, cin_p), lambda i: (0, i, 0))]
        args = [h]
        if apply_bn_in:
            in_specs += [pl.BlockSpec((1, cin_p), lambda i: (0, 0)),
                         pl.BlockSpec((1, cin_p), lambda i: (0, 0))]
            args += [scale_p, shift_p]
        in_specs += [pl.BlockSpec((cin_p, cout_p), lambda i: (0, 0))]
        args += [w_p]

        stats_spec = pl.BlockSpec((8, cout_p), lambda i: (i, 0))
        stats_shape = jax.ShapeDtypeStruct((num_tiles * 8, cout_p), jnp.float32)

        if fuse_max:
            out_specs = [stats_spec,
                         pl.BlockSpec((G, cout_p), lambda i: (i, 0)),
                         pl.BlockSpec((G, cout_p), lambda i: (i, 0))]
            out_shape = [stats_shape,
                         jax.ShapeDtypeStruct((num_groups_pad, cout_p),
                                               jnp.float32),
                         jax.ShapeDtypeStruct((num_groups_pad, cout_p),
                                               jnp.float32)]
            out_bytes = 2 * num_groups_pad * cout_p * 4
        else:
            out_specs = [pl.BlockSpec((K, G, cout_p), lambda i: (0, i, 0)),
                         stats_spec]
            out_shape = [jax.ShapeDtypeStruct((K, num_groups_pad, cout_p),
                                              jnp.bfloat16),
                         stats_shape]
            out_bytes = K * num_groups_pad * cout_p * 2

        in_itemsize = jnp.dtype(args[0].dtype).itemsize
        cost = pl.CostEstimate(
            flops=2 * K * num_groups_pad * cin_p * cout_p,
            transcendentals=0,
            bytes_accessed=(K * num_groups_pad * cin_p * in_itemsize
                            + cin_p * cout_p * jnp.dtype(w_p.dtype).itemsize
                            + out_bytes + num_tiles * 8 * cout_p * 4))

        outs = pl.pallas_call(
            kernel,
            grid=(num_tiles,),
            in_specs=in_specs,
            out_specs=out_specs,
            out_shape=out_shape,
            compiler_params=cp,
            cost_estimate=cost,
        )(*args)

        if fuse_max:
            stats, hmax, hmin = outs
        else:
            h, stats = outs

        scale, shift = _fold_bn(stats, num_tiles, G, K, num_groups,
                                cout, cout_p, gammas[l], betas[l])
        if is_last:
            scale_last, shift_last = scale, shift
        scale_p = _pad_last(scale[None, :], cout_p)   # padded channels -> 0
        shift_p = _pad_last(shift[None, :], cout_p)

    c_last = couts[-1]
    c_last_p = cout_ps[-1]
    if pooling == "avg":
        pooled = pl.pallas_call(
            _make_avgpool_kernel(K, G),
            grid=(num_tiles,),
            in_specs=[pl.BlockSpec((K, G, c_last_p), lambda i: (0, i, 0)),
                      pl.BlockSpec((1, c_last_p), lambda i: (0, 0)),
                      pl.BlockSpec((1, c_last_p), lambda i: (0, 0))],
            out_specs=pl.BlockSpec((G, c_last_p), lambda i: (i, 0)),
            out_shape=jax.ShapeDtypeStruct((num_groups_pad, c_last_p),
                                           jnp.float32),
            compiler_params=cp,
            cost_estimate=pl.CostEstimate(
                flops=2 * K * num_groups_pad * c_last_p,
                transcendentals=0,
                bytes_accessed=(K * num_groups_pad * c_last_p * 2
                                + num_groups_pad * c_last_p * 4)),
        )(h, scale_p, shift_p)
        pooled = pooled[:num_groups, :c_last]
    else:
        # ReLU(scale*x+shift) is monotone per channel -> pick max/min by sign.
        hmax_s = hmax[:num_groups, :c_last]
        hmin_s = hmin[:num_groups, :c_last]
        sel = jnp.where(scale_last[None, :] >= 0.0, hmax_s, hmin_s)
        pooled = jnp.maximum(sel * scale_last[None, :] + shift_last[None, :],
                             0.0)

    return pooled.reshape(B, M, c_last)


# ----------------------------------------------------------------------------
# Sampling / grouping glue (data-dependent sort & gather) in plain JAX.
# ----------------------------------------------------------------------------
def get_dists(points1, points2):
    d = (jnp.sum(points1 ** 2, axis=-1)[:, :, None]
         + jnp.sum(points2 ** 2, axis=-1)[:, None, :]
         - 2.0 * jnp.einsum("bmc,bnc->bmn", points1, points2))
    d = jnp.where(d < 0, 1e-7, d)
    return jnp.sqrt(d).astype(jnp.float32)


def fps(xyz, M, key):
    B, N, _ = xyz.shape
    inds0 = jax.random.randint(key, (B,), 0, N, dtype=jnp.int32)
    centroids0 = jnp.zeros((B, M), dtype=jnp.int32)
    dists0 = jnp.full((B, N), 100000.0, dtype=jnp.float32)
    batchlists = jnp.arange(B)

    def body(i, carry):
        centroids, dists, inds = carry
        centroids = centroids.at[:, i].set(inds)
        cur_point = xyz[batchlists, inds, :]                       # (B, 3)
        cur_dist = jnp.squeeze(get_dists(cur_point[:, None, :], xyz), axis=1)
        dists = jnp.minimum(dists, cur_dist)
        inds = jnp.argmax(dists, axis=1).astype(jnp.int32)
        return centroids, dists, inds

    centroids, _, _ = lax.fori_loop(0, M, body, (centroids0, dists0, inds0))
    return centroids


def gather_points(points, inds):
    # points: (B, N, C), inds: (B, ...) -> (B, ..., C)
    return jax.vmap(lambda p, i: p[i])(points, inds)


def ball_query(xyz, new_xyz, radius, K):
    B, N, _ = xyz.shape
    M = new_xyz.shape[1]
    grouped_inds = jnp.broadcast_to(jnp.arange(N, dtype=jnp.int32), (B, M, N))
    dists = get_dists(new_xyz, xyz)
    grouped_inds = jnp.where(dists > radius, N, grouped_inds)
    grouped_inds = jnp.sort(grouped_inds, axis=-1)[:, :, :K]
    grouped_min = jnp.broadcast_to(grouped_inds[:, :, 0:1], grouped_inds.shape)
    grouped_inds = jnp.where(grouped_inds == N, grouped_min, grouped_inds)
    return grouped_inds


def sample_and_group(xyz, points, M, radius, K, use_xyz, key):
    new_xyz = gather_points(xyz, fps(xyz, M, key))
    grouped_inds = ball_query(xyz, new_xyz, radius, K)
    grouped_xyz = gather_points(xyz, grouped_inds) - new_xyz[:, :, None, :]
    if points is not None:
        grouped_points = gather_points(points, grouped_inds)
        if use_xyz:
            new_points = jnp.concatenate(
                [grouped_xyz.astype(jnp.float32),
                 grouped_points.astype(jnp.float32)], axis=-1)
        else:
            new_points = grouped_points
    else:
        new_points = grouped_xyz
    return new_xyz, new_points, grouped_inds, grouped_xyz


def sample_and_group_all(xyz, points, use_xyz):
    B, M, C = xyz.shape
    new_xyz = jnp.zeros((B, 1, C), jnp.float32)
    grouped_inds = jnp.broadcast_to(jnp.arange(M, dtype=jnp.int32), (B, 1, M))
    grouped_xyz = xyz.reshape(B, 1, M, C)
    if points is not None:
        if use_xyz:
            new_points = jnp.concatenate(
                [xyz.astype(jnp.float32), points.astype(jnp.float32)], axis=2)
        else:
            new_points = points
        new_points = new_points[:, None, :, :]
    else:
        new_points = grouped_xyz
    return new_xyz, new_points, grouped_inds, grouped_xyz


# ----------------------------------------------------------------------------
# Module wrapper
# ----------------------------------------------------------------------------
class PointNetSAModule1:
    def __init__(self, M, radius, K, in_channels, mlp, group_all,
                 bn=True, pooling="max", use_xyz=True, *, key):
        self.M, self.radius, self.K = M, radius, K
        self.group_all = group_all
        self.pooling = pooling
        self.use_xyz = use_xyz
        # Deterministic synthetic parameters matching Conv2d(1x1,bias=False)
        # + BatchNorm2d defaults.  Weights are stored channels-last, already
        # zero-padded to lane width on the cout side (first layer keeps its
        # tiny cin unpadded and stays f32; later layers are bf16 MXU operands).
        self.weights_p, self.gammas, self.betas = [], [], []
        c_in = in_channels
        cin_p = in_channels
        for i, c_out in enumerate(mlp):
            key, sub = jax.random.split(key)
            w = jax.random.normal(sub, (c_in, c_out), jnp.float32) / jnp.sqrt(c_in)
            cout_p = _round_up(c_out, LANE)
            w_pad = jnp.zeros((cin_p, cout_p), jnp.float32).at[:c_in, :c_out].set(w)
            if i > 0:
                w_pad = w_pad.astype(jnp.bfloat16)
            self.weights_p.append(w_pad)
            self.gammas.append(jnp.ones((c_out,), jnp.float32))   # BN defaults
            self.betas.append(jnp.zeros((c_out,), jnp.float32))
            c_in = c_out
            cin_p = cout_p
        # TODO(synk): BatchNorm running_mean/running_var tracking (eval-mode
        # forward) is not implemented; only training-mode batch statistics.

    def __call__(self, xyz, points, *, key):
        if self.group_all:
            new_xyz, new_points, _, _ = sample_and_group_all(
                xyz, points, self.use_xyz)
        else:
            new_xyz, new_points, _, _ = sample_and_group(
                xyz, points, self.M, self.radius, self.K, self.use_xyz, key)
        new_feats = backbone_and_pool(
            new_points, self.weights_p, self.gammas, self.betas,
            pooling=self.pooling)
        return new_xyz, new_feats


if __name__ == "__main__":
    key = jax.random.PRNGKey(0)
    k_xyz, k_pts, k_fps, k_param = jax.random.split(key, 4)

    B, N, C_feat = 2, 16, 3
    M, radius, K = 8, 0.5, 4
    mlp = [16, 32]
    in_channels = C_feat + 3  # use_xyz=True

    xyz = jax.random.uniform(k_xyz, (B, N, 3), dtype=jnp.float32)
    points = jax.random.normal(k_pts, (B, N, C_feat), dtype=jnp.float32)

    module = PointNetSAModule1(M=M, radius=radius, K=K,
                               in_channels=in_channels, mlp=mlp,
                               group_all=False, bn=True, pooling="max",
                               use_xyz=True, key=k_param)

    new_xyz, new_points_out = module(xyz, points, key=k_fps)
    jax.block_until_ready((new_xyz, new_points_out))

    assert new_xyz.shape == (B, M, 3)
    assert new_points_out.shape == (B, M, mlp[-1])
    assert bool(jnp.all(jnp.isfinite(new_points_out)))
    print("KERNEL_OK")
</pallas_src>

<mosaic_0001>
module attributes {stable_mosaic.version = 11 : i64} {
  func.func @kernel(%arg0: i32, %arg1: memref<4x16x6xf32, #tpu.memory_space<vmem>>, %arg2: memref<6x128xf32, #tpu.memory_space<vmem>>, %arg3: memref<4x16x128xbf16, #tpu.memory_space<vmem>>, %arg4: memref<8x128xf32, #tpu.memory_space<vmem>>) attributes {dimension_semantics = [#tpu.dimension_semantics<parallel>], iteration_bounds = array<i64: 1>, scalar_prefetch = 0 : i64, scratch_operands = 0 : i64, tpu.core_type = #tpu.core_type<tc>, window_params = [{transform_indices = @transform_0, window_bounds = array<i64: 4, 16, 6>}, {pipeline_mode = #tpu.pipeline_mode<synchronous>, transform_indices = @transform_1, window_bounds = array<i64: 6, 128>}, {transform_indices = @transform_2, window_bounds = array<i64: 4, 16, 128>}, {transform_indices = @transform_3, window_bounds = array<i64: 8, 128>}]} {
    %c0 = arith.constant 0 : index
    %c0_0 = arith.constant 0 : index
    %0 = vector.load %arg2[%c0, %c0_0] : memref<6x128xf32, #tpu.memory_space<vmem>>, vector<6x128xf32>
    %cst = arith.constant 0.000000e+00 : f32
    %1 = vector.broadcast %cst : f32 to vector<1x128xf32>
    %cst_1 = arith.constant 0.000000e+00 : f32
    %2 = vector.broadcast %cst_1 : f32 to vector<1x128xf32>
    %c0_2 = arith.constant 0 : index
    %c0_3 = arith.constant 0 : index
    %c0_4 = arith.constant 0 : index
    %3 = vector.load %arg1[%c0_2, %c0_3, %c0_4] : memref<4x16x6xf32, #tpu.memory_space<vmem>>, vector<1x16x6xf32>
    %4 = vector.shape_cast %3 : vector<1x16x6xf32> to vector<16x6xf32>
    %cst_5 = arith.constant dense<0.000000e+00> : vector<16x128xf32>
    %5 = tpu.matmul %4, %0, %cst_5 {dimension_numbers = #tpu.dot_dimension_numbers<[1], [0], [0], [1], [0, 0, 1, 1], [], []>} : vector<16x6xf32>, vector<6x128xf32>, vector<16x128xf32> -> vector<16x128xf32>
    %cst_6 = arith.constant dense<0.000000e+00> : vector<128xf32>
    %6 = vector.multi_reduction <add>, %5, %cst_6 [0] : vector<16x128xf32> to vector<128xf32>
    %7 = vector.shape_cast %6 : vector<128xf32> to vector<1x128xf32>
    %8 = arith.addf %1, %7 : vector<1x128xf32>
    %9 = arith.mulf %5, %5 : vector<16x128xf32>
    %cst_7 = arith.constant dense<0.000000e+00> : vector<128xf32>
    %10 = vector.multi_reduction <add>, %9, %cst_7 [0] : vector<16x128xf32> to vector<128xf32>
    %11 = vector.shape_cast %10 : vector<128xf32> to vector<1x128xf32>
    %12 = arith.addf %2, %11 : vector<1x128xf32>
    %13 = arith.truncf %5 : vector<16x128xf32> to vector<16x128xbf16>
    %c0_8 = arith.constant 0 : index
    %c0_9 = arith.constant 0 : index
    %c0_10 = arith.constant 0 : index
    %14 = vector.load %arg3[%c0_8, %c0_9, %c0_10] : memref<4x16x128xbf16, #tpu.memory_space<vmem>>, vector<1x16x128xbf16>
    %15 = vector.shape_cast %14 : vector<1x16x128xbf16> to vector<16x128xbf16>
    %16 = vector.shape_cast %13 : vector<16x128xbf16> to vector<1x16x128xbf16>
    tpu.vector_store %arg3[%c0_8, %c0_9, %c0_10], %16 {strides = array<i32>} : memref<4x16x128xbf16, #tpu.memory_space<vmem>>, vector<1x16x128xbf16>,
    %c1 = arith.constant 1 : index
    %c0_11 = arith.constant 0 : index
    %c0_12 = arith.constant 0 : index
    %17 = vector.load %arg1[%c1, %c0_11, %c0_12] : memref<4x16x6xf32, #tpu.memory_space<vmem>>, vector<1x16x6xf32>
    %18 = vector.shape_cast %17 : vector<1x16x6xf32> to vector<16x6xf32>
    %cst_13 = arith.constant dense<0.000000e+00> : vector<16x128xf32>
    %19 = tpu.matmul %18, %0, %cst_13 {dimension_numbers = #tpu.dot_dimension_numbers<[1], [0], [0], [1], [0, 0, 1, 1], [], []>} : vector<16x6xf32>, vector<6x128xf32>, vector<16x128xf32> -> vector<16x128xf32>
    %cst_14 = arith.constant dense<0.000000e+00> : vector<128xf32>
    %20 = vector.multi_reduction <add>, %19, %cst_14 [0] : vector<16x128xf32> to vector<128xf32>
    %21 = vector.shape_cast %20 : vector<128xf32> to vector<1x128xf32>
    %22 = arith.addf %8, %21 : vector<1x128xf32>
    %23 = arith.mulf %19, %19 : vector<16x128xf32>
    %cst_15 = arith.constant dense<0.000000e+00> : vector<128xf32>
    %24 = vector.multi_reduction <add>, %23, %cst_15 [0] : vector<16x128xf32> to vector<128xf32>
    %25 = vector.shape_cast %24 : vector<128xf32> to vector<1x128xf32>
    %26 = arith.addf %12, %25 : vector<1x128xf32>
    %27 = arith.truncf %19 : vector<16x128xf32> to vector<16x128xbf16>
    %c1_16 = arith.constant 1 : index
    %c0_17 = arith.constant 0 : index
    %c0_18 = arith.constant 0 : index
    %28 = vector.load %arg3[%c1_16, %c0_17, %c0_18] : memref<4x16x128xbf16, #tpu.memory_space<vmem>>, vector<1x16x128xbf16>
    %29 = vector.shape_cast %28 : vector<1x16x128xbf16> to vector<16x128xbf16>
    %30 = vector.shape_cast %27 : vector<16x128xbf16> to vector<1x16x128xbf16>
    tpu.vector_store %arg3[%c1_16, %c0_17, %c0_18], %30 {strides = array<i32>} : memref<4x16x128xbf16, #tpu.memory_space<vmem>>, vector<1x16x128xbf16>,
    %c2 = arith.constant 2 : index
    %c0_19 = arith.constant 0 : index
    %c0_20 = arith.constant 0 : index
    %31 = vector.load %arg1[%c2, %c0_19, %c0_20] : memref<4x16x6xf32, #tpu.memory_space<vmem>>, vector<1x16x6xf32>
    %32 = vector.shape_cast %31 : vector<1x16x6xf32> to vector<16x6xf32>
    %cst_21 = arith.constant dense<0.000000e+00> : vector<16x128xf32>
    %33 = tpu.matmul %32, %0, %cst_21 {dimension_numbers = #tpu.dot_dimension_numbers<[1], [0], [0], [1], [0, 0, 1, 1], [], []>} : vector<16x6xf32>, vector<6x128xf32>, vector<16x128xf32> -> vector<16x128xf32>
    %cst_22 = arith.constant dense<0.000000e+00> : vector<128xf32>
    %34 = vector.multi_reduction <add>, %33, %cst_22 [0] : vector<16x128xf32> to vector<128xf32>
    %35 = vector.shape_cast %34 : vector<128xf32> to vector<1x128xf32>
    %36 = arith.addf %22, %35 : vector<1x128xf32>
    %37 = arith.mulf %33, %33 : vector<16x128xf32>
    %cst_23 = arith.constant dense<0.000000e+00> : vector<128xf32>
    %38 = vector.multi_reduction <add>, %37, %cst_23 [0] : vector<16x128xf32> to vector<128xf32>
    %39 = vector.shape_cast %38 : vector<128xf32> to vector<1x128xf32>
    %40 = arith.addf %26, %39 : vector<1x128xf32>
    %41 = arith.truncf %33 : vector<16x128xf32> to vector<16x128xbf16>
    %c2_24 = arith.constant 2 : index
    %c0_25 = arith.constant 0 : index
    %c0_26 = arith.constant 0 : index
    %42 = vector.load %arg3[%c2_24, %c0_25, %c0_26] : memref<4x16x128xbf16, #tpu.memory_space<vmem>>, vector<1x16x128xbf16>
    %43 = vector.shape_cast %42 : vector<1x16x128xbf16> to vector<16x128xbf16>
    %44 = vector.shape_cast %41 : vector<16x128xbf16> to vector<1x16x128xbf16>
    tpu.vector_store %arg3[%c2_24, %c0_25, %c0_26], %44 {strides = array<i32>} : memref<4x16x128xbf16, #tpu.memory_space<vmem>>, vector<1x16x128xbf16>,
    %c3 = arith.constant 3 : index
    %c0_27 = arith.constant 0 : index
    %c0_28 = arith.constant 0 : index
    %45 = vector.load %arg1[%c3, %c0_27, %c0_28] : memref<4x16x6xf32, #tpu.memory_space<vmem>>, vector<1x16x6xf32>
    %46 = vector.shape_cast %45 : vector<1x16x6xf32> to vector<16x6xf32>
    %cst_29 = arith.constant dense<0.000000e+00> : vector<16x128xf32>
    %47 = tpu.matmul %46, %0, %cst_29 {dimension_numbers = #tpu.dot_dimension_numbers<[1], [0], [0], [1], [0, 0, 1, 1], [], []>} : vector<16x6xf32>, vector<6x128xf32>, vector<16x128xf32> -> vector<16x128xf32>
    %cst_30 = arith.constant dense<0.000000e+00> : vector<128xf32>
    %48 = vector.multi_reduction <add>, %47, %cst_30 [0] : vector<16x128xf32> to vector<128xf32>
    %49 = vector.shape_cast %48 : vector<128xf32> to vector<1x128xf32>
    %50 = arith.addf %36, %49 : vector<1x128xf32>
    %51 = arith.mulf %47, %47 : vector<16x128xf32>
    %cst_31 = arith.constant dense<0.000000e+00> : vector<128xf32>
    %52 = vector.multi_reduction <add>, %51, %cst_31 [0] : vector<16x128xf32> to vector<128xf32>
    %53 = vector.shape_cast %52 : vector<128xf32> to vector<1x128xf32>
    %54 = arith.addf %40, %53 : vector<1x128xf32>
    %55 = arith.truncf %47 : vector<16x128xf32> to vector<16x128xbf16>
    %c3_32 = arith.constant 3 : index
    %c0_33 = arith.constant 0 : index
    %c0_34 = arith.constant 0 : index
    %56 = vector.load %arg3[%c3_32, %c0_33, %c0_34] : memref<4x16x128xbf16, #tpu.memory_space<vmem>>, vector<1x16x128xbf16>
    %57 = vector.shape_cast %56 : vector<1x16x128xbf16> to vector<16x128xbf16>
    %58 = vector.shape_cast %55 : vector<16x128xbf16> to vector<1x16x128xbf16>
    tpu.vector_store %arg3[%c3_32, %c0_33, %c0_34], %58 {strides = array<i32>} : memref<4x16x128xbf16, #tpu.memory_space<vmem>>, vector<1x16x128xbf16>,
    %c0_35 = arith.constant 0 : index
    %c0_36 = arith.constant 0 : index
    %59 = vector.load %arg4[%c0_35, %c0_36] : memref<8x128xf32, #tpu.memory_space<vmem>>, vector<1x128xf32>
    tpu.vector_store %arg4[%c0_35, %c0_36], %50 {strides = array<i32>} : memref<8x128xf32, #tpu.memory_space<vmem>>, vector<1x128xf32>,
    %c1_37 = arith.constant 1 : index
    %c0_38 = arith.constant 0 : index
    %60 = vector.load %arg4[%c1_37, %c0_38] : memref<8x128xf32, #tpu.memory_space<vmem>>, vector<1x128xf32>
    tpu.vector_store %arg4[%c1_37, %c0_38], %54 {strides = array<i32>} : memref<8x128xf32, #tpu.memory_space<vmem>>, vector<1x128xf32>,
    return
  }
  func.func @transform_0(%arg0: i32) -> (i32, i32, i32) {
    %c0_i32 = arith.constant 0 : i32
    %c0_i32_0 = arith.constant 0 : i32
    %c0_i32_1 = arith.constant 0 : i32
    return %c0_i32, %arg0, %c0_i32_0 : i32, i32, i32
  }
  func.func @transform_1(%arg0: i32) -> (i32, i32) {
    %c0_i32 = arith.constant 0 : i32
    %c0_i32_0 = arith.constant 0 : i32
    %c0_i32_1 = arith.constant 0 : i32
    return %c0_i32, %c0_i32_0 : i32, i32
  }
  func.func @transform_2(%arg0: i32) -> (i32, i32, i32) {
    %c0_i32 = arith.constant 0 : i32
    %c0_i32_0 = arith.constant 0 : i32
    %c0_i32_1 = arith.constant 0 : i32
    return %c0_i32, %arg0, %c0_i32_0 : i32, i32, i32
  }
  func.func @transform_3(%arg0: i32) -> (i32, i32) {
    %c0_i32 = arith.constant 0 : i32
    %c0_i32_0 = arith.constant 0 : i32
    return %arg0, %c0_i32 : i32, i32
  }
}

module attributes {stable_mosaic.version = 11 : i64} {
  func.func @kernel(%arg0: i32, %arg1: memref<4x16x128xbf16, #tpu.memory_space<vmem>>, %arg2: memref<1x128xf32, #tpu.memory_space<vmem>>, %arg3: memref<1x128xf32, #tpu.memory_space<vmem>>, %arg4: memref<128x128xbf16, #tpu.memory_space<vmem>>, %arg5: memref<8x128xf32, #tpu.memory_space<vmem>>, %arg6: memref<16x128xf32, #tpu.memory_space<vmem>>, %arg7: memref<16x128xf32, #tpu.memory_space<vmem>>) attributes {dimension_semantics = [#tpu.dimension_semantics<parallel>], iteration_bounds = array<i64: 1>, scalar_prefetch = 0 : i64, scratch_operands = 0 : i64, tpu.core_type = #tpu.core_type<tc>, window_params = [{transform_indices = @transform_0, window_bounds = array<i64: 4, 16, 128>}, {pipeline_mode = #tpu.pipeline_mode<synchronous>, transform_indices = @transform_1, window_bounds = array<i64: 1, 128>}, {pipeline_mode = #tpu.pipeline_mode<synchronous>, transform_indices = @transform_2, window_bounds = array<i64: 1, 128>}, {pipeline_mode = #tpu.pipeline_mode<synchronous>, transform_indices = @transform_3, window_bounds = array<i64: 128, 128>}, {transform_indices = @transform_4, window_bounds = array<i64: 8, 128>}, {transform_indices = @transform_5, window_bounds = array<i64: 16, 128>}, {transform_indices = @transform_6, window_bounds = array<i64: 16, 128>}]} {
    %c0 = arith.constant 0 : index
    %c0_0 = arith.constant 0 : index
    %0 = vector.load %arg4[%c0, %c0_0] : memref<128x128xbf16, #tpu.memory_space<vmem>>, vector<128x128xbf16>
    %c0_1 = arith.constant 0 : index
    %c0_2 = arith.constant 0 : index
    %1 = vector.load %arg2[%c0_1, %c0_2] : memref<1x128xf32, #tpu.memory_space<vmem>>, vector<1x128xf32>
    %2 = vector.shape_cast %1 : vector<1x128xf32> to vector<1x128xf32>
    %3 = vector.broadcast %2 : vector<1x128xf32> to vector<16x128xf32>
    %c0_3 = arith.constant 0 : index
    %c0_4 = arith.constant 0 : index
    %4 = vector.load %arg3[%c0_3, %c0_4] : memref<1x128xf32, #tpu.memory_space<vmem>>, vector<1x128xf32>
    %5 = vector.shape_cast %4 : vector<1x128xf32> to vector<1x128xf32>
    %6 = vector.broadcast %5 : vector<1x128xf32> to vector<16x128xf32>
    %cst = arith.constant 0.000000e+00 : f32
    %7 = vector.broadcast %cst : f32 to vector<1x128xf32>
    %cst_5 = arith.constant 0.000000e+00 : f32
    %8 = vector.broadcast %cst_5 : f32 to vector<1x128xf32>
    %c0_6 = arith.constant 0 : index
    %c0_7 = arith.constant 0 : index
    %c0_8 = arith.constant 0 : index
    %9 = vector.load %arg1[%c0_6, %c0_7, %c0_8] : memref<4x16x128xbf16, #tpu.memory_space<vmem>>, vector<1x16x128xbf16>
    %10 = vector.shape_cast %9 : vector<1x16x128xbf16> to vector<16x128xbf16>
    %11 = arith.extf %10 : vector<16x128xbf16> to vector<16x128xf32>
    %12 = arith.mulf %11, %3 : vector<16x128xf32>
    %13 = arith.addf %12, %6 : vector<16x128xf32>
    %cst_9 = arith.constant 0.000000e+00 : f32
    %14 = vector.broadcast %cst_9 : f32 to vector<16x128xf32>
    %15 = arith.maximumf %13, %14 : vector<16x128xf32>
    %16 = arith.truncf %15 : vector<16x128xf32> to vector<16x128xbf16>
    %cst_10 = arith.constant dense<0.000000e+00> : vector<16x128xf32>
    %17 = tpu.matmul %16, %0, %cst_10 {dimension_numbers = #tpu.dot_dimension_numbers<[1], [0], [0], [1], [0, 0, 1, 1], [], []>} : vector<16x128xbf16>, vector<128x128xbf16>, vector<16x128xf32> -> vector<16x128xf32>
    %cst_11 = arith.constant dense<0.000000e+00> : vector<128xf32>
    %18 = vector.multi_reduction <add>, %17, %cst_11 [0] : vector<16x128xf32> to vector<128xf32>
    %19 = vector.shape_cast %18 : vector<128xf32> to vector<1x128xf32>
    %20 = arith.addf %7, %19 : vector<1x128xf32>
    %21 = arith.mulf %17, %17 : vector<16x128xf32>
    %cst_12 = arith.constant dense<0.000000e+00> : vector<128xf32>
    %22 = vector.multi_reduction <add>, %21, %cst_12 [0] : vector<16x128xf32> to vector<128xf32>
    %23 = vector.shape_cast %22 : vector<128xf32> to vector<1x128xf32>
    %24 = arith.addf %8, %23 : vector<1x128xf32>
    %c1 = arith.constant 1 : index
    %c0_13 = arith.constant 0 : index
    %c0_14 = arith.constant 0 : index
    %25 = vector.load %arg1[%c1, %c0_13, %c0_14] : memref<4x16x128xbf16, #tpu.memory_space<vmem>>, vector<1x16x128xbf16>
    %26 = vector.shape_cast %25 : vector<1x16x128xbf16> to vector<16x128xbf16>
    %27 = arith.extf %26 : vector<16x128xbf16> to vector<16x128xf32>
    %28 = arith.mulf %27, %3 : vector<16x128xf32>
    %29 = arith.addf %28, %6 : vector<16x128xf32>
    %cst_15 = arith.constant 0.000000e+00 : f32
    %30 = vector.broadcast %cst_15 : f32 to vector<16x128xf32>
    %31 = arith.maximumf %29, %30 : vector<16x128xf32>
    %32 = arith.truncf %31 : vector<16x128xf32> to vector<16x128xbf16>
    %cst_16 = arith.constant dense<0.000000e+00> : vector<16x128xf32>
    %33 = tpu.matmul %32, %0, %cst_16 {dimension_numbers = #tpu.dot_dimension_numbers<[1], [0], [0], [1], [0, 0, 1, 1], [], []>} : vector<16x128xbf16>, vector<128x128xbf16>, vector<16x128xf32> -> vector<16x128xf32>
    %cst_17 = arith.constant dense<0.000000e+00> : vector<128xf32>
    %34 = vector.multi_reduction <add>, %33, %cst_17 [0] : vector<16x128xf32> to vector<128xf32>
    %35 = vector.shape_cast %34 : vector<128xf32> to vector<1x128xf32>
    %36 = arith.addf %20, %35 : vector<1x128xf32>
    %37 = arith.mulf %33, %33 : vector<16x128xf32>
    %cst_18 = arith.constant dense<0.000000e+00> : vector<128xf32>
    %38 = vector.multi_reduction <add>, %37, %cst_18 [0] : vector<16x128xf32> to vector<128xf32>
    %39 = vector.shape_cast %38 : vector<128xf32> to vector<1x128xf32>
    %40 = arith.addf %24, %39 : vector<1x128xf32>
    %41 = arith.maximumf %17, %33 : vector<16x128xf32>
    %42 = arith.minimumf %17, %33 : vector<16x128xf32>
    %c2 = arith.constant 2 : index
    %c0_19 = arith.constant 0 : index
    %c0_20 = arith.constant 0 : index
    %43 = vector.load %arg1[%c2, %c0_19, %c0_20] : memref<4x16x128xbf16, #tpu.memory_space<vmem>>, vector<1x16x128xbf16>
    %44 = vector.shape_cast %43 : vector<1x16x128xbf16> to vector<16x128xbf16>
    %45 = arith.extf %44 : vector<16x128xbf16> to vector<16x128xf32>
    %46 = arith.mulf %45, %3 : vector<16x128xf32>
    %47 = arith.addf %46, %6 : vector<16x128xf32>
    %cst_21 = arith.constant 0.000000e+00 : f32
    %48 = vector.broadcast %cst_21 : f32 to vector<16x128xf32>
    %49 = arith.maximumf %47, %48 : vector<16x128xf32>
    %50 = arith.truncf %49 : vector<16x128xf32> to vector<16x128xbf16>
    %cst_22 = arith.constant dense<0.000000e+00> : vector<16x128xf32>
    %51 = tpu.matmul %50, %0, %cst_22 {dimension_numbers = #tpu.dot_dimension_numbers<[1], [0], [0], [1], [0, 0, 1, 1], [], []>} : vector<16x128xbf16>, vector<128x128xbf16>, vector<16x128xf32> -> vector<16x128xf32>
    %cst_23 = arith.constant dense<0.000000e+00> : vector<128xf32>
    %52 = vector.multi_reduction <add>, %51, %cst_23 [0] : vector<16x128xf32> to vector<128xf32>
    %53 = vector.shape_cast %52 : vector<128xf32> to vector<1x128xf32>
    %54 = arith.addf %36, %53 : vector<1x128xf32>
    %55 = arith.mulf %51, %51 : vector<16x128xf32>
    %cst_24 = arith.constant dense<0.000000e+00> : vector<128xf32>
    %56 = vector.multi_reduction <add>, %55, %cst_24 [0] : vector<16x128xf32> to vector<128xf32>
    %57 = vector.shape_cast %56 : vector<128xf32> to vector<1x128xf32>
    %58 = arith.addf %40, %57 : vector<1x128xf32>
    %59 = arith.maximumf %41, %51 : vector<16x128xf32>
    %60 = arith.minimumf %42, %51 : vector<16x128xf32>
    %c3 = arith.constant 3 : index
    %c0_25 = arith.constant 0 : index
    %c0_26 = arith.constant 0 : index
    %61 = vector.load %arg1[%c3, %c0_25, %c0_26] : memref<4x16x128xbf16, #tpu.memory_space<vmem>>, vector<1x16x128xbf16>
    %62 = vector.shape_cast %61 : vector<1x16x128xbf16> to vector<16x128xbf16>
    %63 = arith.extf %62 : vector<16x128xbf16> to vector<16x128xf32>
    %64 = arith.mulf %63, %3 : vector<16x128xf32>
    %65 = arith.addf %64, %6 : vector<16x128xf32>
    %cst_27 = arith.constant 0.000000e+00 : f32
    %66 = vector.broadcast %cst_27 : f32 to vector<16x128xf32>
    %67 = arith.maximumf %65, %66 : vector<16x128xf32>
    %68 = arith.truncf %67 : vector<16x128xf32> to vector<16x128xbf16>
    %cst_28 = arith.constant dense<0.000000e+00> : vector<16x128xf32>
    %69 = tpu.matmul %68, %0, %cst_28 {dimension_numbers = #tpu.dot_dimension_numbers<[1], [0], [0], [1], [0, 0, 1, 1], [], []>} : vector<16x128xbf16>, vector<128x128xbf16>, vector<16x128xf32> -> vector<16x128xf32>
    %cst_29 = arith.constant dense<0.000000e+00> : vector<128xf32>
    %70 = vector.multi_reduction <add>, %69, %cst_29 [0] : vector<16x128xf32> to vector<128xf32>
    %71 = vector.shape_cast %70 : vector<128xf32> to vector<1x128xf32>
    %72 = arith.addf %54, %71 : vector<1x128xf32>
    %73 = arith.mulf %69, %69 : vector<16x128xf32>
    %cst_30 = arith.constant dense<0.000000e+00> : vector<128xf32>
    %74 = vector.multi_reduction <add>, %73, %cst_30 [0] : vector<16x128xf32> to vector<128xf32>
    %75 = vector.shape_cast %74 : vector<128xf32> to vector<1x128xf32>
    %76 = arith.addf %58, %75 : vector<1x128xf32>
    %77 = arith.maximumf %59, %69 : vector<16x128xf32>
    %78 = arith.minimumf %60, %69 : vector<16x128xf32>
    %c0_31 = arith.constant 0 : index
    %c0_32 = arith.constant 0 : index
    %79 = vector.load %arg5[%c0_31, %c0_32] : memref<8x128xf32, #tpu.memory_space<vmem>>, vector<1x128xf32>
    tpu.vector_store %arg5[%c0_31, %c0_32], %72 {strides = array<i32>} : memref<8x128xf32, #tpu.memory_space<vmem>>, vector<1x128xf32>,
    %c1_33 = arith.constant 1 : index
    %c0_34 = arith.constant 0 : index
    %80 = vector.load %arg5[%c1_33, %c0_34] : memref<8x128xf32, #tpu.memory_space<vmem>>, vector<1x128xf32>
    tpu.vector_store %arg5[%c1_33, %c0_34], %76 {strides = array<i32>} : memref<8x128xf32, #tpu.memory_space<vmem>>, vector<1x128xf32>,
    %c0_35 = arith.constant 0 : index
    %c0_36 = arith.constant 0 : index
    %81 = vector.load %arg6[%c0_35, %c0_36] : memref<16x128xf32, #tpu.memory_space<vmem>>, vector<16x128xf32>
    tpu.vector_store %arg6[%c0_35, %c0_36], %77 {strides = array<i32>} : memref<16x128xf32, #tpu.memory_space<vmem>>, vector<16x128xf32>,
    %c0_37 = arith.constant 0 : index
    %c0_38 = arith.constant 0 : index
    %82 = vector.load %arg7[%c0_37, %c0_38] : memref<16x128xf32, #tpu.memory_space<vmem>>, vector<16x128xf32>
    tpu.vector_store %arg7[%c0_37, %c0_38], %78 {strides = array<i32>} : memref<16x128xf32, #tpu.memory_space<vmem>>, vector<16x128xf32>,
    return
  }
  func.func @transform_0(%arg0: i32) -> (i32, i32, i32) {
    %c0_i32 = arith.constant 0 : i32
    %c0_i32_0 = arith.constant 0 : i32
    %c0_i32_1 = arith.constant 0 : i32
    return %c0_i32, %arg0, %c0_i32_0 : i32, i32, i32
  }
  func.func @transform_1(%arg0: i32) -> (i32, i32) {
    %c0_i32 = arith.constant 0 : i32
    %c0_i32_0 = arith.constant 0 : i32
    %c0_i32_1 = arith.constant 0 : i32
    return %c0_i32, %c0_i32_0 : i32, i32
  }
  func.func @transform_2(%arg0: i32) -> (i32, i32) {
    %c0_i32 = arith.constant 0 : i32
    %c0_i32_0 = arith.constant 0 : i32
    %c0_i32_1 = arith.constant 0 : i32
    return %c0_i32, %c0_i32_0 : i32, i32
  }
  func.func @transform_3(%arg0: i32) -> (i32, i32) {
    %c0_i32 = arith.constant 0 : i32
    %c0_i32_0 = arith.constant 0 : i32
    %c0_i32_1 = arith.constant 0 : i32
    return %c0_i32, %c0_i32_0 : i32, i32
  }
  func.func @transform_4(%arg0: i32) -> (i32, i32) {
    %c0_i32 = arith.constant 0 : i32
    %c0_i32_0 = arith.constant 0 : i32
    return %arg0, %c0_i32 : i32, i32
  }
  func.func @transform_5(%arg0: i32) -> (i32, i32) {
    %c0_i32 = arith.constant 0 : i32
    %c0_i32_0 = arith.constant 0 : i32
    return %arg0, %c0_i32 : i32, i32
  }
  func.func @transform_6(%arg0: i32) -> (i32, i32) {
    %c0_i32 = arith.constant 0 : i32
    %c0_i32_0 = arith.constant 0 : i32
    return %arg0, %c0_i32 : i32, i32
  }
}

</mosaic_0001>

<bundles_post_ra>
// kernel: backbone_and_pool.2
= control target key start
LH: loop header
LB: loop body
LE: loop exit
PB: predicated region body
PF: predicated region fallthrough
CT: control target
= control target key end

     0   :  { %vm23_vm0 = vcmask 1045504   ;;  %vm16_vm1 = vcmask 48128   ;;  %s655_s1 = inlined_call_operand.vmem [shape: f32[6,128], index: 1, kind: input, shape index: {}]   ;;  %s656_s0 = inlined_call_operand.vmem [shape: f32[4,16,6], index: 0, kind: input, shape index: {}]   ;;  %s657_s2 = inlined_call_operand.vmem [shape: bf16[4,16,128], index: 2, kind: output, shape index: {0}]   ;;  %s658_s3 = inlined_call_operand.vmem [shape: f32[8,128], index: 3, kind: output, shape index: {1}]  }
   0x1   :  { %v13_v0 = vld [vmem:[%s655_s1] sm:$0x3f]  ;;  %v484_v2 = vld [vmem:[%s656_s0 + $0x10] sm:$0xff]  ;;  %v15_v3 = vld [vmem:[%s656_s0 + $0x8] sm:$0xff] }
   0x2   :  { %v14_v1 = vld [vmem:[%s656_s0] sm:$0xff]  ;;  %554 = vmatprep.subr.msk.mxu0 %vm23_vm0, %v13_v0  ;;  %559 = vmatprep.subr.msk.mxu1 %vm23_vm0, %v13_v0  ;;  %v485_v4 = vld [vmem:[%s656_s0 + $0x18] sm:$0xff]  ;;  %v502_v6 = vld [vmem:[%s656_s0 + $0x30] sm:$0xff] }
   0x3   :  { %555 = vmatpush3.msk.msra.mxu0 %vm23_vm0, %v13_v0  ;;  %556 = vmatprep.mubr.msk.f32.mxu0 %vm16_vm1, %v14_v1  ;;  %v493_v5 = vld [vmem:[%s656_s0 + $0x20] sm:$0xff]  ;;  %v494_v7 = vld [vmem:[%s656_s0 + $0x28] sm:$0xff]  ;;  %v503_v8 = vld [vmem:[%s656_s0 + $0x38] sm:$0xff] }
   0x4   :  { %560 = vmatpush3.msk.msra.mxu1 %vm23_vm0, %v13_v0  ;;  %561 = vmatprep.mubr.msk.f32.mxu1 %vm16_vm1, %v484_v2 }
   0x5   :  { %557 = vmatmul.mubr.msk.f32.vlgmr.msra.gmra.mrb[0].mxu0 %vm16_vm1, %v15_v3  ;;  %562 = vmatmul.mubr.msk.f32.vlgmr.msra.gmra.mrb[0].mxu1 %vm16_vm1, %v485_v4 }
   0x6   :  { %564 = vmatprep.subr.msk.mxu0 %vm23_vm0, %v13_v0  ;;  %569 = vmatprep.subr.msk.mxu1 %vm23_vm0, %v13_v0 }
   0x7   :  { %565 = vmatpush3.msk.msra.mxu0 %vm23_vm0, %v13_v0  ;;  %566 = vmatprep.mubr.msk.f32.mxu0 %vm16_vm1, %v493_v5 }
   0x8   :  { %570 = vmatpush3.msk.msra.mxu1 %vm23_vm0, %v13_v0  ;;  %571 = vmatprep.mubr.msk.f32.mxu1 %vm16_vm1, %v502_v6 }
   0x9   :  { %567 = vmatmul.mubr.msk.f32.vlgmr.msra.gmra.mrb[2].mxu0 %vm16_vm1, %v494_v7  ;;  %572 = vmatmul.mubr.msk.f32.vlgmr.msra.gmra.mrb[2].mxu1 %vm16_vm1, %v503_v8 }
  0xd8   :  { %v558_v9 = vpop.f32.mrb[0].mxu0  ;;  %v563_v10 = vpop.f32.mrb[0].mxu1 }
  0xd9   :  { %v111_v11 = vmul.f32 %v558_v9, %v558_v9  ;;  %v223_v12 = vmul.f32 %v563_v10, %v563_v10  ;;  %v93_v13 = vpop.f32.mrb[1].mxu0  ;;  %v205_v14 = vpop.f32.mrb[1].mxu1 }
  0xda   :  { %v102_v15 = vadd.f32 %v558_v9, %v93_v13  ;;  %v110_v16 = vmul.f32 %v93_v13, %v93_v13  ;;  %v522_v17 = vpack.c.bf16 %v558_v9, %v93_v13  ;;  %v214_v18 = vadd.f32 %v563_v10, %v205_v14 }
  0xdb   :  { %v222_v19 = vmul.f32 %v205_v14, %v205_v14  ;;  %v527_v20 = vpack.c.bf16 %v563_v10, %v205_v14 }
  0xdc   :  { %v103_v21 = vrot.slane %v102_v15, 4  ;;  %v112_v22 = vadd.f32 %v111_v11, %v110_v16  ;;  %523 = vst [vmem:[%s657_s2] sm:$0xff] %v522_v17   ;;  %v215_v23 = vrot.slane %v214_v18, 4  ;;  %v568_v24 = vpop.f32.mrb[2].mxu0  ;;  %v573_v25 = vpop.f32.mrb[2].mxu1 }
  0xdd   :  { %v224_v26 = vadd.f32 %v223_v12, %v222_v19  ;;  %539 = vst [vmem:[%s657_s2 + $0x8] sm:$0xff] %v527_v20   ;;  %v336_v27 = vmul.f32 %v568_v24, %v568_v24  ;;  %v449_v28 = vmul.f32 %v573_v25, %v573_v25  ;;  %v318_v29 = vpop.f32.mrb[3].mxu0  ;;  %v431_v30 = vpop.f32.mrb[3].mxu1 }
  0xde   :  { %v104_v31 = vadd.f32 %v103_v21, %v102_v15  ;;  %v113_v32 = vrot.slane %v112_v22, 4  ;;  %v216_v33 = vadd.f32 %v215_v23, %v214_v18  ;;  %v327_v34 = vadd.f32 %v568_v24, %v318_v29 }
  0xdf   :  { %v225_v35 = vrot.slane %v224_v26, 4  ;;  %v335_v36 = vmul.f32 %v318_v29, %v318_v29  ;;  %v532_v37 = vpack.c.bf16 %v568_v24, %v318_v29  ;;  %v440_v38 = vadd.f32 %v573_v25, %v431_v30 }
  0xe0   :  { %v105_v39 = vrot.slane %v104_v31, 2  ;;  %v114_v40 = vadd.f32 %v113_v32, %v112_v22  ;;  %v217_v41 = vrot.slane %v216_v33, 2  ;;  %v328_v42 = vrot.slane %v327_v34, 4 }
  0xe1   :  { %v226_v43 = vadd.f32 %v225_v35, %v224_v26  ;;  %v337_v44 = vadd.f32 %v336_v27, %v335_v36  ;;  %540 = vst [vmem:[%s657_s2 + $0x10] sm:$0xff] %v532_v37   ;;  %v441_v45 = vrot.slane %v440_v38, 4  ;;  %v448_v46 = vmul.f32 %v431_v30, %v431_v30 }
  0xe2   :  { %v106_v47 = vadd.f32 %v105_v39, %v104_v31  ;;  %v115_v48 = vrot.slane %v114_v40, 2  ;;  %v218_v49 = vadd.f32 %v217_v41, %v216_v33  ;;  %v329_v50 = vadd.f32 %v328_v42, %v327_v34 }
  0xe3   :  { %v227_v51 = vrot.slane %v226_v43, 2  ;;  %v338_v52 = vrot.slane %v337_v44, 4  ;;  %v442_v53 = vadd.f32 %v441_v45, %v440_v38  ;;  %v450_v54 = vadd.f32 %v449_v28, %v448_v46 }
  0xe4   :  { %v107_v55 = vrot.slane %v106_v47, 1  ;;  %v116_v56 = vadd.f32 %v115_v48, %v114_v40  ;;  %v219_v57 = vrot.slane %v218_v49, 1  ;;  %v330_v58 = vrot.slane %v329_v50, 2 }
  0xe5   :  { %v228_v59 = vadd.f32 %v227_v51, %v226_v43  ;;  %v339_v60 = vadd.f32 %v338_v52, %v337_v44  ;;  %v443_v61 = vrot.slane %v442_v53, 2  ;;  %v451_v62 = vrot.slane %v450_v54, 4 }
  0xe6   :  { %v108_v63 = vadd.f32 %v107_v55, %v106_v47  ;;  %v117_v0 = vrot.slane %v116_v56, 1  ;;  %v220_v1 = vadd.f32 %v219_v57, %v218_v49  ;;  %v331_v2 = vadd.f32 %v330_v58, %v329_v50 }
  0xe7   :  { %v229_v3 = vrot.slane %v228_v59, 1  ;;  %v340_v4 = vrot.slane %v339_v60, 2  ;;  %v444_v5 = vadd.f32 %v443_v61, %v442_v53  ;;  %v452_v6 = vadd.f32 %v451_v62, %v450_v54 }
  0xe8   :  { %v118_v7 = vadd.f32 %v117_v0, %v116_v56  ;;  %v221_v8 = vadd.f32 %v220_v1, %v108_v63  ;;  %v332_v9 = vrot.slane %v331_v2, 1  ;;  %v537_v10 = vpack.c.bf16 %v573_v25, %v431_v30 }
  0xe9   :  { %v230_v11 = vadd.f32 %v229_v3, %v228_v59  ;;  %v341_v12 = vadd.f32 %v340_v4, %v339_v60  ;;  %v445_v13 = vrot.slane %v444_v5, 1  ;;  %v453_v14 = vrot.slane %v452_v6, 2 }
  0xea   :  { %v333_v15 = vadd.f32 %v332_v9, %v331_v2  ;;  %541 = vst [vmem:[%s657_s2 + $0x18] sm:$0xff] %v537_v10  }
  0xeb   :  { %v231_v16 = vadd.f32 %v230_v11, %v118_v7  ;;  %v342_v17 = vrot.slane %v341_v12, 1  ;;  %v454_v18 = vadd.f32 %v453_v14, %v452_v6  ;;  %v446_v20 = vadd.f32 %v445_v13, %v444_v5 }
  0xec   :  { %v334_v19 = vadd.f32 %v333_v15, %v221_v8 }
  0xed   :  { %v343_v21 = vadd.f32 %v342_v17, %v341_v12  ;;  %v455_v22 = vrot.slane %v454_v18, 1 }
  0xee   :  { %v447_v23 = vadd.f32 %v446_v20, %v334_v19 }
  0xef   :  { %v344_v24 = vadd.f32 %v343_v21, %v231_v16  ;;  %v456_v26 = vadd.f32 %v455_v22, %v454_v18 }
  0xf0   :  { %469 = vst [vmem:[%s658_s3] sm:$0x1] %v447_v23 }
  0xf1   :  { %v457_v25 = vadd.f32 %v456_v26, %v344_v24 }
  0xf3   :  { %470 = vst [vmem:[%s658_s3 + $0x1] sm:$0x1] %v457_v25 }

// kernel: backbone_and_pool.3
= control target key start
LH: loop header
LB: loop body
LE: loop exit
PB: predicated region body
PF: predicated region fallthrough
CT: control target
= control target key end

     0   :  { %v573_v0 = vmov 0.0   ;;  %vm574_vm0 = vmmov 0   ;;  %s772_s3 = inlined_call_operand.vmem [shape: bf16[128,128], index: 3, kind: input, shape index: {}]   ;;  %s773_s0 = inlined_call_operand.vmem [shape: bf16[4,16,128], index: 0, kind: input, shape index: {}]   ;;  %s774_s1 = inlined_call_operand.vmem [shape: f32[1,128], index: 1, kind: input, shape index: {}]   ;;  %s775_s2 = inlined_call_operand.vmem [shape: f32[1,128], index: 2, kind: input, shape index: {}]   ;;  %s776_s5 = inlined_call_operand.vmem [shape: f32[16,128], index: 5, kind: output, shape index: {1}]   ;;  %s777_s6 = inlined_call_operand.vmem [shape: f32[16,128], index: 6, kind: output, shape index: {2}]   ;;  %s778_s4 = inlined_call_operand.vmem [shape: f32[8,128], index: 4, kind: output, shape index: {0}]  }
   0x1   :  { %483 = vmatprep.subr.bf16.mxu0 %v573_v0  ;;  %503 = vmatprep.subr.bf16.mxu1 %v573_v0  ;;  %v615_v1 = vld [vmem:[%s772_s3] sm:$0xff]   ;;  %v626_v2 = vld [vmem:[%s772_s3 + $0x8] sm:$0xff]   ;;  %v635_v3 = vld [vmem:[%s772_s3 + $0x10] sm:$0xff]  }
   0x2   :  { %499 = vmatprep.mubr.msk.bf16.mxu0 %vm574_vm0, %v573_v0  ;;  %519 = vmatprep.mubr.msk.bf16.mxu1 %vm574_vm0, %v573_v0  ;;  %v644_v4 = vld [vmem:[%s772_s3 + $0x18] sm:$0xff]   ;;  %v429_v5 = vld [vmem:[%s773_s0] sm:$0xff]   ;;  %v444_v6 = vld [vmem:[%s773_s0 + $0x8] sm:$0xff]  }
   0x3   :  { %484 = vmatpush3.bf16.msra.mxu0 %v615_v1  ;;  %504 = vmatpush3.bf16.msra.mxu1 %v615_v1  ;;  %v430_v7 = vunpack.c.l.bf16 %v429_v5  ;;  %v431_v8 = vunpack.c.h.bf16 %v429_v5  ;;  %v434_v9 = vunpack.c.l.bf16 %v444_v6  ;;  %v435_v10 = vunpack.c.h.bf16 %v444_v6  ;;  %v659_v11 = vld [vmem:[%s772_s3 + $0x20] sm:$0xff]   ;;  %v677_v17 = vld [vmem:[%s772_s3 + $0x28] sm:$0xff]   ;;  %v695_v23 = vld [vmem:[%s772_s3 + $0x30] sm:$0xff]  }
   0x4   :  { %485 = vmatprep.subr.bf16.mxu0 %v573_v0  ;;  %505 = vmatprep.subr.bf16.mxu1 %v573_v0  ;;  %v664_v12 = vld [vmem:[%s774_s1] ss:$0 sm:$0xff]  ;;  %v572_v28 = vld [vmem:[%s772_s3 + $0x38] sm:$0xff]   ;;  %v445_v31 = vld [vmem:[%s773_s0 + $0x10] sm:$0xff]  }
   0x5   :  { %v55_v13 = vmul.f32 %v430_v7, %v664_v12  ;;  %v56_v14 = vmul.f32 %v431_v8, %v664_v12  ;;  %v174_v15 = vmul.f32 %v434_v9, %v664_v12  ;;  %v175_v16 = vmul.f32 %v435_v10, %v664_v12  ;;  %v682_v18 = vld [vmem:[%s775_s2] ss:$0 sm:$0xff]  ;;  %v446_v32 = vld [vmem:[%s773_s0 + $0x18] sm:$0xff]  }
   0x6   :  { %v438_v33 = vunpack.c.l.bf16 %v445_v31  ;;  %v439_v34 = vunpack.c.h.bf16 %v445_v31  ;;  %v442_v35 = vunpack.c.l.bf16 %v446_v32  ;;  %v443_v36 = vunpack.c.h.bf16 %v446_v32 }
   0x7   :  { %486 = vmatpush3.bf16.msra.mxu0 %v626_v2  ;;  %506 = vmatpush3.bf16.msra.mxu1 %v626_v2  ;;  %v57_v19 = vadd.f32 %v682_v18, %v55_v13  ;;  %v58_v20 = vadd.f32 %v682_v18, %v56_v14  ;;  %v176_v21 = vadd.f32 %v682_v18, %v174_v15 }
   0x8   :  { %487 = vmatprep.subr.bf16.mxu0 %v573_v0  ;;  %507 = vmatprep.subr.bf16.mxu1 %v573_v0  ;;  %v177_v22 = vadd.f32 %v682_v18, %v175_v16  ;;  %v249_v37 = vmul.f32 %v438_v33, %v664_v12  ;;  %v250_v38 = vmul.f32 %v439_v34, %v664_v12 }
   0x9   :  { %v59_v24 = vmax.f32 %v57_v19, 0.0  ;;  %v60_v25 = vmax.f32 %v58_v20, 0.0  ;;  %v178_v26 = vmax.f32 %v176_v21, 0.0  ;;  %v324_v39 = vmul.f32 %v442_v35, %v664_v12 }
   0xa   :  { %v179_v27 = vmax.f32 %v177_v22, 0.0  ;;  %v325_v40 = vmul.f32 %v443_v36, %v664_v12  ;;  %v251_v41 = vadd.f32 %v682_v18, %v249_v37  ;;  %v252_v42 = vadd.f32 %v682_v18, %v250_v38 }
   0xb   :  { %488 = vmatpush3.bf16.msra.mxu0 %v635_v3  ;;  %508 = vmatpush3.bf16.msra.mxu1 %v635_v3  ;;  %v61_v29 = vpack.c.bf16 %v60_v25, %v59_v24  ;;  %v326_v43 = vadd.f32 %v682_v18, %v324_v39 }
   0xc   :  { %489 = vmatprep.subr.bf16.mxu0 %v573_v0  ;;  %509 = vmatprep.subr.bf16.mxu1 %v573_v0  ;;  %v180_v30 = vpack.c.bf16 %v179_v27, %v178_v26  ;;  %v327_v44 = vadd.f32 %v682_v18, %v325_v40  ;;  %v253_v45 = vmax.f32 %v251_v41, 0.0  ;;  %v254_v46 = vmax.f32 %v252_v42, 0.0 }
   0xd   :  { %v328_v47 = vmax.f32 %v326_v43, 0.0 }
   0xe   :  { %v329_v48 = vmax.f32 %v327_v44, 0.0  ;;  %v255_v49 = vpack.c.bf16 %v254_v46, %v253_v45 }
   0xf   :  { %490 = vmatpush3.bf16.msra.mxu0 %v644_v4  ;;  %510 = vmatpush3.bf16.msra.mxu1 %v644_v4 }
  0x10   :  { %491 = vmatprep.subr.bf16.mxu0 %v573_v0  ;;  %511 = vmatprep.subr.bf16.mxu1 %v573_v0  ;;  %v330_v50 = vpack.c.bf16 %v329_v48, %v328_v47 }
  0x13   :  { %492 = vmatpush3.bf16.msra.mxu0 %v659_v11  ;;  %512 = vmatpush3.bf16.msra.mxu1 %v659_v11 }
  0x14   :  { %493 = vmatprep.subr.bf16.mxu0 %v573_v0  ;;  %513 = vmatprep.subr.bf16.mxu1 %v573_v0 }
  0x17   :  { %494 = vmatpush3.bf16.msra.mxu0 %v677_v17  ;;  %514 = vmatpush3.bf16.msra.mxu1 %v677_v17 }
  0x18   :  { %495 = vmatprep.subr.bf16.mxu0 %v573_v0  ;;  %515 = vmatprep.subr.bf16.mxu1 %v573_v0 }
  0x1b   :  { %496 = vmatpush3.bf16.msra.mxu0 %v695_v23  ;;  %516 = vmatpush3.bf16.msra.mxu1 %v695_v23 }
  0x1c   :  { %497 = vmatprep.subr.bf16.mxu0 %v573_v0  ;;  %517 = vmatprep.subr.bf16.mxu1 %v573_v0 }
  0x1f   :  { %498 = vmatpush3.bf16.msra.mxu0 %v572_v28  ;;  %518 = vmatpush3.bf16.msra.mxu1 %v572_v28 }
  0x20   :  { %523 = vmatprep.subr.bf16.mxu0 %v573_v0  ;;  %543 = vmatprep.subr.bf16.mxu1 %v573_v0 }
  0x22   :  { %500 = vmatmul.mubr.bf16.vlgmr.msra.gmra.mrb[0].mxu0 %v61_v29  ;;  %520 = vmatmul.mubr.bf16.vlgmr.msra.gmra.mrb[0].mxu1 %v180_v30 }
  0x23   :  { %524 = vmatpush3.bf16.msra.mxu0 %v615_v1  ;;  %544 = vmatpush3.bf16.msra.mxu1 %v615_v1 }
  0x24   :  { %525 = vmatprep.subr.bf16.mxu0 %v573_v0  ;;  %545 = vmatprep.subr.bf16.mxu1 %v573_v0 }
  0x25   :  { %539 = vmatprep.mubr.msk.bf16.mxu0 %vm574_vm0, %v573_v0  ;;  %559 = vmatprep.mubr.msk.bf16.mxu1 %vm574_vm0, %v573_v0 }
  0x27   :  { %526 = vmatpush3.bf16.msra.mxu0 %v626_v2  ;;  %546 = vmatpush3.bf16.msra.mxu1 %v626_v2 }
  0x28   :  { %527 = vmatprep.subr.bf16.mxu0 %v573_v0  ;;  %547 = vmatprep.subr.bf16.mxu1 %v573_v0 }
  0x2b   :  { %528 = vmatpush3.bf16.msra.mxu0 %v635_v3  ;;  %548 = vmatpush3.bf16.msra.mxu1 %v635_v3 }
  0x2c   :  { %529 = vmatprep.subr.bf16.mxu0 %v573_v0  ;;  %549 = vmatprep.subr.bf16.mxu1 %v573_v0 }
  0x2f   :  { %530 = vmatpush3.bf16.msra.mxu0 %v644_v4  ;;  %550 = vmatpush3.bf16.msra.mxu1 %v644_v4 }
  0x30   :  { %531 = vmatprep.subr.bf16.mxu0 %v573_v0  ;;  %551 = vmatprep.subr.bf16.mxu1 %v573_v0 }
  0x33   :  { %532 = vmatpush3.bf16.msra.mxu0 %v659_v11  ;;  %552 = vmatpush3.bf16.msra.mxu1 %v659_v11 }
  0x34   :  { %533 = vmatprep.subr.bf16.mxu0 %v573_v0  ;;  %553 = vmatprep.subr.bf16.mxu1 %v573_v0 }
  0x37   :  { %534 = vmatpush3.bf16.msra.mxu0 %v677_v17  ;;  %554 = vmatpush3.bf16.msra.mxu1 %v677_v17 }
  0x38   :  { %535 = vmatprep.subr.bf16.mxu0 %v573_v0  ;;  %555 = vmatprep.subr.bf16.mxu1 %v573_v0 }
  0x3b   :  { %536 = vmatpush3.bf16.msra.mxu0 %v695_v23  ;;  %556 = vmatpush3.bf16.msra.mxu1 %v695_v23 }
  0x3c   :  { %537 = vmatprep.subr.bf16.mxu0 %v573_v0  ;;  %557 = vmatprep.subr.bf16.mxu1 %v573_v0 }
  0x3f   :  { %538 = vmatpush3.bf16.msra.mxu0 %v572_v28  ;;  %558 = vmatpush3.bf16.msra.mxu1 %v572_v28 }
  0x42   :  { %540 = vmatmul.mubr.bf16.vlgmr.msra.gmra.mrb[4].mxu0 %v255_v49  ;;  %560 = vmatmul.mubr.bf16.vlgmr.msra.gmra.mrb[4].mxu1 %v330_v50 }
  0xf5   :  { %v144_v51 = vpop.f32.mrb[0].mxu0  ;;  %v215_v52 = vpop.f32.mrb[0].mxu1 }
  0xf6   :  { %v159_v53 = vmul.f32 %v144_v51, %v144_v51  ;;  %v230_v54 = vmul.f32 %v215_v52, %v215_v52  ;;  %v240_v55 = vmax.f32 %v144_v51, %v215_v52  ;;  %v242_v56 = vmin.f32 %v144_v51, %v215_v52  ;;  %v501_v57 = vpop.f32.mrb[1].mxu0  ;;  %v521_v58 = vpop.f32.mrb[1].mxu1 }
  0xf7   :  { %v147_v59 = vpop.f32.mrb[2].mxu0  ;;  %v218_v60 = vpop.f32.mrb[2].mxu1 }
  0xf8   :  { %v151_v61 = vadd.f32 %v147_v59, %v144_v51  ;;  %v160_v62 = vmul.f32 %v147_v59, %v147_v59  ;;  %v222_v63 = vadd.f32 %v218_v60, %v215_v52  ;;  %v231_v0 = vmul.f32 %v218_v60, %v218_v60  ;;  %v502_v1 = vpop.f32.mrb[3].mxu0  ;;  %v522_v2 = vpop.f32.mrb[3].mxu1 }
  0xf9   :  { %v241_v3 = vmax.f32 %v147_v59, %v218_v60  ;;  %v243_v4 = vmin.f32 %v147_v59, %v218_v60 }
  0xfa   :  { %v152_v5 = vrot.slane %v151_v61, 4  ;;  %v161_v6 = vadd.f32 %v160_v62, %v159_v53  ;;  %v223_v7 = vrot.slane %v222_v63, 4  ;;  %v232_v8 = vadd.f32 %v231_v0, %v230_v54 }
  0xfc   :  { %v153_v9 = vadd.f32 %v152_v5, %v151_v61  ;;  %v162_v10 = vrot.slane %v161_v6, 4  ;;  %v224_v11 = vadd.f32 %v223_v7, %v222_v63  ;;  %v233_v12 = vrot.slane %v232_v8, 4 }
  0xfe   :  { %v154_v13 = vrot.slane %v153_v9, 2  ;;  %v163_v14 = vadd.f32 %v162_v10, %v161_v6  ;;  %v225_v15 = vrot.slane %v224_v11, 2  ;;  %v234_v16 = vadd.f32 %v233_v12, %v232_v8 }
 0x100   :  { %v155_v17 = vadd.f32 %v154_v13, %v153_v9  ;;  %v164_v18 = vrot.slane %v163_v14, 2  ;;  %v226_v19 = vadd.f32 %v225_v15, %v224_v11  ;;  %v235_v20 = vrot.slane %v234_v16, 2 }
 0x102   :  { %v156_v21 = vrot.slane %v155_v17, 1  ;;  %v165_v22 = vadd.f32 %v164_v18, %v163_v14  ;;  %v227_v23 = vrot.slane %v226_v19, 1  ;;  %v236_v24 = vadd.f32 %v235_v20, %v234_v16 }
 0x104   :  { %v157_v25 = vadd.f32 %v156_v21, %v155_v17  ;;  %v166_v26 = vrot.slane %v165_v22, 1  ;;  %v228_v27 = vadd.f32 %v227_v23, %v226_v19  ;;  %v237_v28 = vrot.slane %v236_v24, 1 }
 0x106   :  { %v167_v29 = vadd.f32 %v166_v26, %v165_v22  ;;  %v229_v30 = vadd.f32 %v228_v27, %v157_v25  ;;  %v238_v31 = vadd.f32 %v237_v28, %v236_v24 }
 0x108   :  { %v239_v32 = vadd.f32 %v238_v31, %v167_v29 }
 0x115   :  { %v290_v33 = vpop.f32.mrb[4].mxu0  ;;  %v365_v34 = vpop.f32.mrb[4].mxu1 }
 0x116   :  { %v315_v35 = vmax.f32 %v240_v55, %v290_v33  ;;  %v317_v36 = vmin.f32 %v242_v56, %v290_v33  ;;  %v541_v37 = vpop.f32.mrb[5].mxu0  ;;  %v561_v38 = vpop.f32.mrb[5].mxu1  ;;  %v305_v39 = vmul.f32 %v290_v33, %v290_v33  ;;  %v380_v40 = vmul.f32 %v365_v34, %v365_v34 }
 0x117   :  { %v293_v41 = vpop.f32.mrb[6].mxu0  ;;  %v368_v42 = vpop.f32.mrb[6].mxu1 }
 0x118   :  { %v390_v43 = vmax.f32 %v315_v35, %v365_v34  ;;  %v392_v44 = vmin.f32 %v317_v36, %v365_v34  ;;  %v297_v45 = vadd.f32 %v293_v41, %v290_v33  ;;  %v306_v46 = vmul.f32 %v293_v41, %v293_v41  ;;  %v542_v47 = vpop.f32.mrb[7].mxu0  ;;  %v562_v48 = vpop.f32.mrb[7].mxu1 }
 0x119   :  { %v316_v49 = vmax.f32 %v241_v3, %v293_v41  ;;  %v318_v50 = vmin.f32 %v243_v4, %v293_v41  ;;  %v372_v51 = vadd.f32 %v368_v42, %v365_v34  ;;  %v381_v52 = vmul.f32 %v368_v42, %v368_v42 }
 0x11a   :  { %396 = vst [vmem:[%s776_s5] sm:$0xff] %v390_v43  ;;  %398 = vst [vmem:[%s777_s6] sm:$0xff] %v392_v44  ;;  %v298_v53 = vrot.slane %v297_v45, 4  ;;  %v307_v54 = vadd.f32 %v306_v46, %v305_v39 }
 0x11b   :  { %v373_v55 = vrot.slane %v372_v51, 4  ;;  %v382_v56 = vadd.f32 %v381_v52, %v380_v40  ;;  %v391_v57 = vmax.f32 %v316_v49, %v368_v42  ;;  %v393_v58 = vmin.f32 %v318_v50, %v368_v42 }
 0x11c   :  { %v299_v59 = vadd.f32 %v298_v53, %v297_v45  ;;  %v308_v60 = vrot.slane %v307_v54, 4 }
 0x11d   :  { %v374_v61 = vadd.f32 %v373_v55, %v372_v51  ;;  %v383_v62 = vrot.slane %v382_v56, 4  ;;  %397 = vst [vmem:[%s776_s5 + $0x8] sm:$0xff] %v391_v57  ;;  %399 = vst [vmem:[%s777_s6 + $0x8] sm:$0xff] %v393_v58 }
 0x11e   :  { %v300_v63 = vrot.slane %v299_v59, 2  ;;  %v309_v0 = vadd.f32 %v308_v60, %v307_v54 }
 0x11f   :  { %v375_v1 = vrot.slane %v374_v61, 2  ;;  %v384_v2 = vadd.f32 %v383_v62, %v382_v56 }
 0x120   :  { %v301_v3 = vadd.f32 %v300_v63, %v299_v59  ;;  %v310_v4 = vrot.slane %v309_v0, 2 }
 0x121   :  { %v376_v5 = vadd.f32 %v375_v1, %v374_v61  ;;  %v385_v6 = vrot.slane %v384_v2, 2 }
 0x122   :  { %v302_v7 = vrot.slane %v301_v3, 1  ;;  %v311_v8 = vadd.f32 %v310_v4, %v309_v0 }
 0x123   :  { %v377_v9 = vrot.slane %v376_v5, 1  ;;  %v386_v10 = vadd.f32 %v385_v6, %v384_v2 }
 0x124   :  { %v303_v11 = vadd.f32 %v302_v7, %v301_v3  ;;  %v312_v12 = vrot.slane %v311_v8, 1 }
 0x125   :  { %v387_v13 = vrot.slane %v386_v10, 1  ;;  %v378_v16 = vadd.f32 %v377_v9, %v376_v5 }
 0x126   :  { %v304_v14 = vadd.f32 %v303_v11, %v229_v30  ;;  %v313_v15 = vadd.f32 %v312_v12, %v311_v8 }
 0x127   :  { %v388_v19 = vadd.f32 %v387_v13, %v386_v10 }
 0x128   :  { %v314_v17 = vadd.f32 %v313_v15, %v239_v32  ;;  %v379_v18 = vadd.f32 %v378_v16, %v304_v14 }
 0x12a   :  { %v389_v20 = vadd.f32 %v388_v19, %v314_v17  ;;  %394 = vst [vmem:[%s778_s4] sm:$0x1] %v379_v18 }
 0x12c   :  { %395 = vst [vmem:[%s778_s4 + $0x1] sm:$0x1] %v389_v20 }

</bundles_post_ra>
